<compile_context>
chip_gen: v5e
topology: v5e:2x2
jax: 0.10.0
libtpu: 0.0.40
codegen_flags: <defaults>
</compile_context>

<pallas_src>
import functools

import jax
import jax.numpy as jnp
from jax.experimental import pallas as pl
from jax.experimental.pallas import tpu as pltpu

LANES = 128
SUBLANES = 8
BLOCK_BYTES = 4 << 20            # 4 MiB per input block (8192 f32 rows)
VMEM_LIMIT_BYTES = 40 << 20      # 2 in x 2 bufs x 4 MiB = 16 MiB + headroom (< v7x 64 MiB)
SMALL_FALLBACK_ELEMS = 16 * 1024  # below this, fused XLA beats a pallas_call


def _round_up(x, m):
    return (x + m - 1) // m * m


def _l1_sum_kernel(p_ref, t_ref, out_ref, acc_ref, *,
                   steps_per_part, total_steps, block_rows,
                   last_valid_rows, has_overhang_steps):
    """Per-partial running sum(|p - t|) held in a single (8,128) f32 vreg slab."""
    c = pl.program_id(0)          # partial-sum index (megacore-parallel axis)
    j = pl.program_id(1)          # reduction step within this partial

    @pl.when(j == 0)
    def _():
        acc_ref[...] = jnp.zeros_like(acc_ref)

    def add_block(masked):
        d = jnp.abs(p_ref[...].astype(jnp.float32)
                    - t_ref[...].astype(jnp.float32))
        if masked:
            # Row-level mask with a static threshold: no global flat index, so
            # no int32 overflow for huge inputs.  This also zeroes the Pallas
            # edge-padding garbage of the over-hanging final block.
            row = jax.lax.broadcasted_iota(jnp.int32, d.shape, 0)
            d = jnp.where(row < last_valid_rows, d, 0.0)
        # Strip reduction keeps the running sum in-register; only one vreg of
        # accumulator state ever touches VMEM.
        acc_ref[...] += d.reshape(-1, SUBLANES, LANES).sum(axis=0)

    need_row_mask = last_valid_rows != block_rows     # static
    if not need_row_mask and not has_overhang_steps:
        # Fully aligned: every grid step is a full, valid block (branch-free).
        add_block(masked=False)
    else:
        logical_block = c * steps_per_part + j

        @pl.when(logical_block < total_steps - 1)
        def _():
            add_block(masked=False)

        @pl.when(logical_block == total_steps - 1)
        def _():
            add_block(masked=need_row_mask)
        # logical_block > total_steps - 1: clamped duplicate fetch -> skip add.

    @pl.when(j == pl.num_programs(1) - 1)
    def _():
        out_ref[0, 0] = jnp.sum(acc_ref[...])   # single cross-lane reduce


def mode_amps_loss_ref(preds_coef, target_ck, scale=1.0, weight=1.0):
    """Pure-JAX reference with the exact module math."""
    s = jnp.asarray(scale, jnp.float32)
    w = jnp.asarray(weight, jnp.float32)
    p = s * preds_coef.astype(jnp.float32)
    t = s * target_ck.astype(jnp.float32)
    return w * jnp.mean(jnp.abs(p - t))


def mode_amps_loss(preds_coef, target_ck, scale=1.0, weight=1.0,
                   use_pallas=None, block_bytes=BLOCK_BYTES):
    """weight * L1Loss(scale*preds_coef, scale*target_ck), mean reduction."""
    assert preds_coef.shape == target_ck.shape
    n_true = preds_coef.size
    if n_true == 0:
        return jnp.float32(jnp.nan)   # matches torch L1Loss(mean) on empty input

    if use_pallas is None:
        use_pallas = n_true >= SMALL_FALLBACK_ELEMS
    if not use_pallas:
        return mode_amps_loss_ref(preds_coef, target_ck, scale, weight)

    p_flat = preds_coef.reshape(-1)
    t_flat = target_ck.reshape(-1)

    # Bulk/tail split instead of jnp.pad: the lane-aligned bulk streams through
    # the kernel; the <=127-element tail is a tiny XLA sum (no full-array copy).
    rem = n_true % LANES
    bulk = n_true - rem
    tail_sum = jnp.float32(0.0)
    if rem:
        tail_sum = jnp.sum(jnp.abs(p_flat[bulk:].astype(jnp.float32)
                                   - t_flat[bulk:].astype(jnp.float32)))

    # |s*p - s*t| = |s| * |p - t|; scale/weight/mean applied once, outside.
    factor = (jnp.abs(jnp.asarray(scale, jnp.float32))
              * jnp.asarray(weight, jnp.float32) / jnp.float32(n_true))

    if bulk == 0:
        return factor * tail_sum

    rows = bulk // LANES
    p2 = p_flat[:bulk].reshape(rows, LANES)
    t2 = t_flat[:bulk].reshape(rows, LANES)

    # Byte-budgeted block so f32 / bf16 / int8 all get the same DMA
    # amortization; rows rounded to the dtype's minimum sublane tile.
    itemsize = jnp.dtype(p2.dtype).itemsize
    sublane = SUBLANES * max(1, 4 // max(1, itemsize))   # f32:8 bf16:16 int8:32
    rows_budget = max(sublane, block_bytes // (LANES * itemsize))
    block_rows = min(_round_up(rows_budget, sublane), _round_up(rows, sublane))

    total_steps = pl.cdiv(rows, block_rows)
    num_parts = 2 if total_steps >= 2 else 1      # shard across v7x's 2 TCs
    steps_per_part = pl.cdiv(total_steps, num_parts)
    has_overhang_steps = num_parts * steps_per_part != total_steps
    last_valid_rows = rows - (total_steps - 1) * block_rows   # static

    def in_map(c, j):
        # Clamp so over-hanging (c, j) steps re-fetch the last valid block;
        # the kernel skips their contribution entirely.
        return (jnp.minimum(c * steps_per_part + j, total_steps - 1), 0)

    kern = functools.partial(
        _l1_sum_kernel,
        steps_per_part=steps_per_part, total_steps=total_steps,
        block_rows=block_rows, last_valid_rows=last_valid_rows,
        has_overhang_steps=has_overhang_steps)

    partials = pl.pallas_call(
        kern,
        out_shape=jax.ShapeDtypeStruct((num_parts, 1), jnp.float32),
        grid_spec=pltpu.PrefetchScalarGridSpec(
            num_scalar_prefetch=0,
            grid=(num_parts, steps_per_part),
            in_specs=[
                pl.BlockSpec((block_rows, LANES), in_map),
                pl.BlockSpec((block_rows, LANES), in_map),
            ],
            out_specs=pl.BlockSpec((1, 1), lambda c, j: (c, 0),
                                   memory_space=pltpu.SMEM),
            scratch_shapes=[pltpu.VMEM((SUBLANES, LANES), jnp.float32)],
        ),
        compiler_params=pltpu.CompilerParams(
            dimension_semantics=("parallel", "arbitrary"),
            vmem_limit_bytes=VMEM_LIMIT_BYTES),
    )(p2, t2)

    # TODO(synk): on 1-TC chips (v5e/v6e) num_parts could be forced to 1 via a
    # hardware query to avoid one clamped duplicate-block fetch per call.
    return factor * (jnp.sum(partials) + tail_sum)


if __name__ == "__main__":
    key = jax.random.PRNGKey(0)
    k1, k2, k3, k4, k5, k6 = jax.random.split(key, 6)

    scale, weight = 2.5, 0.75

    # 1) Primary small coefficient tensors (f32): single-block, branch-free
    #    fully-aligned fast path.
    p1 = jax.random.normal(k1, (2, 4, 16, 16), dtype=jnp.float32)
    t1 = jax.random.normal(k2, (2, 4, 16, 16), dtype=jnp.float32)
    out1 = jax.block_until_ready(
        mode_amps_loss(p1, t1, scale, weight, use_pallas=True))
    ref1 = mode_amps_loss_ref(p1, t1, scale, weight)
    assert jnp.allclose(out1, ref1, rtol=1e-5, atol=1e-6), (out1, ref1)

    # 2) Multi-step + 2-partial (megacore) split + overhanging clamped step +
    #    masked last block (tiny blocks forced via block_bytes).
    p2 = jax.random.normal(k3, (3, 6, 128), dtype=jnp.float32)
    t2 = jax.random.normal(k4, (3, 6, 128), dtype=jnp.float32)
    out2 = jax.block_until_ready(
        mode_amps_loss(p2, t2, scale, weight, use_pallas=True,
                       block_bytes=SUBLANES * LANES * 4))
    ref2 = mode_amps_loss_ref(p2, t2, scale, weight)
    assert jnp.allclose(out2, ref2, rtol=1e-5, atol=1e-6), (out2, ref2)

    # 3) Non-lane-aligned size, bf16 inputs, negative scale: bulk kernel with
    #    row-masked last block + tiny XLA tail sum + abs(scale) hoist +
    #    dtype-aware sublane tile.
    p3 = jax.random.normal(k5, (5, 90), dtype=jnp.bfloat16)
    t3 = jax.random.normal(k6, (5, 90), dtype=jnp.bfloat16)
    out3 = jax.block_until_ready(
        mode_amps_loss(p3, t3, scale=-1.5, weight=weight, use_pallas=True))
    ref3 = mode_amps_loss_ref(p3, t3, scale=-1.5, weight=weight)
    assert jnp.allclose(out3, ref3, rtol=1e-4, atol=1e-5), (out3, ref3)

    print("KERNEL_OK")
</pallas_src>

<mosaic_0001>
module attributes {stable_mosaic.version = 11 : i64} {
  func.func @_l1_sum_kernel(%arg0: i32, %arg1: i32, %arg2: memref<16x128xf32, #tpu.memory_space<vmem>>, %arg3: memref<16x128xf32, #tpu.memory_space<vmem>>, %arg4: memref<1x1xf32, #tpu.memory_space<smem>>, %arg5: memref<8x128xf32, #tpu.memory_space<vmem>>) attributes {dimension_semantics = [#tpu.dimension_semantics<parallel>, #tpu.dimension_semantics<arbitrary>], iteration_bounds = array<i64: 1, 1>, scalar_prefetch = 0 : i64, scratch_operands = 1 : i64, tpu.core_type = #tpu.core_type<tc>, window_params = [{transform_indices = @transform_0, window_bounds = array<i64: 16, 128>}, {transform_indices = @transform_1, window_bounds = array<i64: 16, 128>}, {transform_indices = @transform_2, window_bounds = array<i64: 1, 1>}]} {
    %c0_i32 = arith.constant 0 : i32
    %0 = arith.cmpi eq, %arg1, %c0_i32 : i32
    %1 = arith.extui %0 : i1 to i32
    %c0_i32_0 = arith.constant 0 : i32
    %2 = arith.cmpi ne, %1, %c0_i32_0 : i32
    scf.if %2 {
      %cst_10 = arith.constant 0.000000e+00 : f32
      %15 = vector.broadcast %cst_10 : f32 to vector<8x128xf32>
      %c0_11 = arith.constant 0 : index
      %c0_12 = arith.constant 0 : index
      %16 = vector.load %arg5[%c0_11, %c0_12] : memref<8x128xf32, #tpu.memory_space<vmem>>, vector<8x128xf32>
      tpu.vector_store %arg5[%c0_11, %c0_12], %15 {strides = array<i32>} : memref<8x128xf32, #tpu.memory_space<vmem>>, vector<8x128xf32>,
    } else {
    }
    %c0 = arith.constant 0 : index
    %c0_1 = arith.constant 0 : index
    %3 = vector.load %arg2[%c0, %c0_1] : memref<16x128xf32, #tpu.memory_space<vmem>>, vector<16x128xf32>
    %c0_2 = arith.constant 0 : index
    %c0_3 = arith.constant 0 : index
    %4 = vector.load %arg3[%c0_2, %c0_3] : memref<16x128xf32, #tpu.memory_space<vmem>>, vector<16x128xf32>
    %5 = arith.subf %3, %4 : vector<16x128xf32>
    %6 = math.absf %5 : vector<16x128xf32>
    %c0_4 = arith.constant 0 : index
    %c0_5 = arith.constant 0 : index
    %7 = vector.load %arg5[%c0_4, %c0_5] : memref<8x128xf32, #tpu.memory_space<vmem>>, vector<8x128xf32>
    %8 = vector.shape_cast %6 : vector<16x128xf32> to vector<2x8x128xf32>
    %cst = arith.constant dense<0.000000e+00> : vector<8x128xf32>
    %9 = vector.multi_reduction <add>, %8, %cst [0] : vector<2x8x128xf32> to vector<8x128xf32>
    %10 = arith.addf %7, %9 : vector<8x128xf32>
    %c0_6 = arith.constant 0 : index
    %c0_7 = arith.constant 0 : index
    %11 = vector.load %arg5[%c0_6, %c0_7] : memref<8x128xf32, #tpu.memory_space<vmem>>, vector<8x128xf32>
    tpu.vector_store %arg5[%c0_6, %c0_7], %10 {strides = array<i32>} : memref<8x128xf32, #tpu.memory_space<vmem>>, vector<8x128xf32>,
    %c0_i32_8 = arith.constant 0 : i32
    %12 = arith.cmpi eq, %arg1, %c0_i32_8 : i32
    %13 = arith.extui %12 : i1 to i32
    %c0_i32_9 = arith.constant 0 : i32
    %14 = arith.cmpi ne, %13, %c0_i32_9 : i32
    scf.if %14 {
      %c0_10 = arith.constant 0 : index
      %c0_11 = arith.constant 0 : index
      %15 = vector.load %arg5[%c0_10, %c0_11] : memref<8x128xf32, #tpu.memory_space<vmem>>, vector<8x128xf32>
      %16 = vector.shape_cast %15 : vector<8x128xf32> to vector<1x8x128xf32>
      %cst_12 = arith.constant dense<0.000000e+00> : vector<1xf32>
      %17 = vector.multi_reduction <add>, %16, %cst_12 [1, 2] : vector<1x8x128xf32> to vector<1xf32>
      %18 = vector.shape_cast %17 : vector<1xf32> to vector<1x1x1xf32>
      %19 = vector.extract %18[0, 0, 0] : f32 from vector<1x1x1xf32>
      %c0_13 = arith.constant 0 : index
      %c0_14 = arith.constant 0 : index
      %20 = memref.load %arg4[%c0_13, %c0_14] : memref<1x1xf32, #tpu.memory_space<smem>>
      memref.store %19, %arg4[%c0_13, %c0_14] : memref<1x1xf32, #tpu.memory_space<smem>>
    } else {
    }
    return
  }
  func.func @transform_0(%arg0: i32, %arg1: i32) -> (i32, i32) {
    %c1_i32 = arith.constant 1 : i32
    %0 = arith.muli %arg0, %c1_i32 : i32
    %1 = arith.addi %0, %arg1 : i32
    %c0_i32 = arith.constant 0 : i32
    %2 = arith.minsi %1, %c0_i32 : i32
    %c0_i32_0 = arith.constant 0 : i32
    %c0_i32_1 = arith.constant 0 : i32
    return %2, %c0_i32_0 : i32, i32
  }
  func.func @transform_1(%arg0: i32, %arg1: i32) -> (i32, i32) {
    %c1_i32 = arith.constant 1 : i32
    %0 = arith.muli %arg0, %c1_i32 : i32
    %1 = arith.addi %0, %arg1 : i32
    %c0_i32 = arith.constant 0 : i32
    %2 = arith.minsi %1, %c0_i32 : i32
    %c0_i32_0 = arith.constant 0 : i32
    %c0_i32_1 = arith.constant 0 : i32
    return %2, %c0_i32_0 : i32, i32
  }
  func.func @transform_2(%arg0: i32, %arg1: i32) -> (i32, i32) {
    %c0_i32 = arith.constant 0 : i32
    %c0_i32_0 = arith.constant 0 : i32
    return %arg0, %c0_i32 : i32, i32
  }
}

</mosaic_0001>

<bundles_post_ra>
// kernel: tpu_custom_call.1
= control target key start
LH: loop header
LB: loop body
LE: loop exit
PB: predicated region body
PF: predicated region fallthrough
CT: control target
= control target key end

     0   :  { %7 = vsyncpa [#allocation4], 0  ;;  %s219_s0 = inlined_call_operand.hbm [shape: f32[16,128], index: 0, kind: input, shape index: {}]   ;;  %s220_s1 = inlined_call_operand.hbm [shape: f32[16,128], index: 1, kind: input, shape index: {}]   ;;  %s221_s2 = inlined_call_operand.hbm [shape: f32[1,1], index: 2, kind: output, shape index: {}]  }
   0x1   :  { %8 = vsyncpa [#allocation7], 0 }
   0x2   :  { %9 = vsyncpa [#allocation5], 0  ;;  %s20_s11 = sshll.u32 %s219_s0, 4  ;;  %s190_s12 = smov [#allocation3]   ;;  %s21_s11 = int_to_ptr.hbm [resolvable:$true] %s20_s11 }
   0x3   :  { %s22_s13 = sshll.u32 %s190_s12, 4  ;;  %s39_s16 = sshll.u32 %s220_s1, 4  ;;  %s23_s13 = int_to_ptr.vmem [resolvable:$true] %s22_s13  ;;  %s40_s16 = int_to_ptr.hbm [resolvable:$true] %s39_s16 }
   0x4   :  { %s191_s17 = smov 128   ;;  %s192_s18 = smov 8  }
   0x5   :  { %28 = dma.hbm_to_vmem [thread:$0]  %s21_s11, 256, %s23_s13, [#allocation4], %s191_s17, %s191_s17, %s192_s18  }
   0x6   :  { %s193_s19 = smov [#allocation6]  }
   0x7   :  { %s41_s20 = sshll.u32 %s193_s19, 4  ;;  %s42_s20 = int_to_ptr.vmem [resolvable:$true] %s41_s20 }
   0x8   :  { %47 = dma.hbm_to_vmem [thread:$0]  %s40_s16, 256, %s42_s20, [#allocation7], %s191_s17, %s191_s17, %s192_s18  }
   0x9   :  { %184 = dma.done.wait [#allocation4], 256  }
   0xa   :  { %185 = vsyncadd [#allocation4], 4294967040 }
   0xb   :  { %186 = dma.done.wait [#allocation7], 256  }
   0xc   :  { %187 = vsyncadd [#allocation7], 4294967040  ;;  %v69_v0 = vld [vmem:[#allocation3] sm:$0xff]  ;;  %v70_v1 = vld [vmem:[#allocation3 + $0x8] sm:$0xff]  ;;  %s101_s21 = sshll.u32 %s221_s2, 4  ;;  %s194_s23 = smov [#allocation8]   ;;  %s102_s21 = int_to_ptr.hbm [resolvable:$true] %s101_s21 }
   0xd   :  { %v71_v2 = vld [vmem:[#allocation6] sm:$0xff]  ;;  %v72_v3 = vld [vmem:[#allocation6 + $0x8] sm:$0xff] }
   0xe   :  { %v73_v4 = vsub.f32 %v69_v0, %v71_v2  ;;  %v74_v5 = vsub.f32 %v70_v1, %v72_v3 }
  0x10   :  { %v75_v6 = vand.u32 2147483647, %v73_v4  ;;  %v76_v7 = vand.u32 2147483647, %v74_v5 }
  0x12   :  { %v78_v8 = vadd.f32 %v76_v7, %v75_v6 }
  0x14   :  { %85 = vadd.xlane.f32.xlu0 %v78_v8 }
  0x87   :  { %v86_v9 = vpop.xlane.xlu0 %85 }
  0x88   :  { %v87_v10 = vrot.slane %v86_v9, 4 }
  0x8a   :  { %v88_v11 = vadd.f32 %v87_v10, %v86_v9 }
  0x8c   :  { %v89_v12 = vrot.slane %v88_v11, 2 }
  0x8e   :  { %v90_v13 = vadd.f32 %v89_v12, %v88_v11 }
  0x90   :  { %v91_v14 = vrot.slane %v90_v13, 1 }
  0x92   :  { %v92_v15 = vadd.f32 %v91_v14, %v90_v13 }
  0x94   :  { %117 = vpush %v92_v15 }
  0xc5   :  { %s118_s22 = spop %117 }
  0xc6   :  { %95 = sst [smem:[#allocation8]] %s118_s22 }
  0xc7   :  { %104 = dma.smem_to_hbm %s194_s23, 16, %s102_s21, [#allocation5]  }
  0xc8   :  { %188 = dma.done.wait [#allocation5], 16  }
  0xc9   :  { %189 = vsyncadd [#allocation5], 4294967280 }
  0xca   :  { %109 = sfence }
  0xcb   :  { %110 = vsyncpa [#allocation4], 1 }
  0xcc   :  { %111 = vsyncpa [#allocation7], 1 }
  0xcd   :  { %112 = vsyncpa [#allocation5], 1 }

</bundles_post_ra>
